<compile_context>
chip_gen: v6e
topology: v6e:2x2x1
jax: 0.10.0
libtpu: 0.0.40
codegen_flags: <defaults>
</compile_context>

<pallas_src>
import functools

import jax
import jax.numpy as jnp
from jax.experimental import pallas as pl
from jax.experimental.pallas import tpu as pltpu

_LANE = 128      # lane width: feature dims padded to multiples of this
_SUBLANE = 8     # sublane width: batch tile is a multiple of this


def _round_up(n: int, m: int) -> int:
    return ((n + m - 1) // m) * m


def _pad_axis(a, axis: int, target: int):
    pad = target - a.shape[axis]
    if pad <= 0:
        return a
    widths = [(0, 0)] * a.ndim
    widths[axis] = (0, pad)
    return jnp.pad(a, widths)


def _mlp_kernel(x_ref, w1_ref, b1_ref, w2_ref, b2_ref, w3_ref, b3_ref, o_ref):
    # In-kernel downcast of the activation tile (cheap VPU work hidden under the matmul).
    # All matmuls accumulate in f32; bias/ReLU elementwise math stays in f32 (right for v5e too).
    x = x_ref[...].astype(w1_ref.dtype)
    h = jnp.dot(x, w1_ref[...], preferred_element_type=jnp.float32)
    h = jnp.maximum(h + b1_ref[...], 0.0)
    h = jnp.dot(h.astype(w2_ref.dtype), w2_ref[...], preferred_element_type=jnp.float32)
    h = jnp.maximum(h + b2_ref[...], 0.0)
    out = jnp.dot(h.astype(w3_ref.dtype), w3_ref[...], preferred_element_type=jnp.float32)
    o_ref[...] = (out + b3_ref[...]).astype(o_ref.dtype)


def prepare_mlp_params(params, compute_dtype=None):
    """One-time (outside the hot path) preparation of the weights:
      * pad every feature dim to a lane-dense multiple of 128 (exact: zeros flow through
        matmul / bias / ReLU; padded output columns are sliced off after the kernel),
      * optionally cast the weight matrices to a low-precision MXU dtype (bf16 works on
        v5e / v6e / v7x).  Biases stay float32.
    Returns (prepared_params, d_out)."""
    w1, b1 = params["w1"], params["b1"]
    w2, b2 = params["w2"], params["b2"]
    w3, b3 = params["w3"], params["b3"]
    d_out = w3.shape[1]
    h1p = _round_up(w1.shape[1], _LANE)
    h2p = _round_up(w2.shape[1], _LANE)
    d_out_p = _round_up(d_out, _LANE)
    wd = w1.dtype if compute_dtype is None else compute_dtype
    prepared = {
        "w1": _pad_axis(w1, 1, h1p).astype(wd),
        "b1": _pad_axis(b1, 1, h1p).astype(jnp.float32),
        "w2": _pad_axis(_pad_axis(w2, 0, h1p), 1, h2p).astype(wd),
        "b2": _pad_axis(b2, 1, h2p).astype(jnp.float32),
        "w3": _pad_axis(_pad_axis(w3, 0, h2p), 1, d_out_p).astype(wd),
        "b3": _pad_axis(b3, 1, d_out_p).astype(jnp.float32),
    }
    return prepared, d_out


@functools.partial(jax.jit, static_argnames=("d_out", "block_batch", "out_dtype"))
def mlp_forward(x, prepared, *, d_out: int, block_batch: int = 512, out_dtype=None):
    """x: [B, input_dim].  prepared: output of prepare_mlp_params (padded weights [in, out]).
    block_batch: batch tile (sweep 512/1024 for large B).  out_dtype: kernel output dtype
    (e.g. jnp.bfloat16 to halve the output HBM stream); defaults to x.dtype."""
    w1, b1 = prepared["w1"], prepared["b1"]
    w2, b2 = prepared["w2"], prepared["b2"]
    w3, b3 = prepared["w3"], prepared["b3"]

    B, d_in = x.shape
    h1p = w1.shape[1]
    h2p = w2.shape[1]
    d_out_p = w3.shape[1]
    out_dtype = x.dtype if out_dtype is None else out_dtype

    # Batch tile selection:
    #   * small B  -> single grid step covering the whole batch (no per-step overhead),
    #   * B > 256  -> cap at block_batch and force >= 2 balanced steps so the "parallel"
    #                 grid axis can shard across both v7x TensorCores.
    if B > 256:
        bm = min(block_batch, _round_up(pl.cdiv(B, 2), _SUBLANE))
    else:
        bm = _round_up(B, _SUBLANE)
    bm = max(_SUBLANE, bm)
    # Ragged edge block handled by Pallas: no x padding, no batch slicing of the output.
    # Safe because rows are independent (no reduction across the batch axis).
    grid = (pl.cdiv(B, bm),)

    full = lambda shape: pl.BlockSpec(shape, lambda i: (0, 0))

    out = pl.pallas_call(
        _mlp_kernel,
        out_shape=jax.ShapeDtypeStruct((B, d_out_p), out_dtype),
        grid_spec=pltpu.PrefetchScalarGridSpec(
            num_scalar_prefetch=0,
            grid=grid,
            in_specs=[
                pl.BlockSpec((bm, d_in), lambda i: (i, 0)),  # x tile (only per-step DMA)
                full((d_in, h1p)),                            # w1 (resident across steps)
                full((1, h1p)),                               # b1
                full((h1p, h2p)),                             # w2
                full((1, h2p)),                               # b2
                full((h2p, d_out_p)),                         # w3
                full((1, d_out_p)),                           # b3
            ],
            out_specs=pl.BlockSpec((bm, d_out_p), lambda i: (i, 0)),
        ),
        compiler_params=pltpu.CompilerParams(
            dimension_semantics=("parallel",),  # shard batch steps across TCs (v7x megacore)
        ),
    )(x, w1, b1, w2, b2, w3, b3)

    # Drop the lane-padding columns (kept padded inside the kernel so the output store is
    # unmasked / lane-dense).  Fuse into the consumer instead if it tolerates padded cols.
    return out[:, :d_out]


def init_mlp_params(key, input_dim, output_dim, hidden_size=(128, 64)):
    """Mimics PyTorch Linear default init (uniform +-1/sqrt(fan_in)).
    Weights stored as [in, out] (transposed vs. torch's [out, in])."""
    dims = [input_dim, *hidden_size, output_dim]
    params = {}
    for idx in range(len(dims) - 1):
        fan_in, fan_out = dims[idx], dims[idx + 1]
        key, kw, kb = jax.random.split(key, 3)
        bound = 1.0 / (fan_in ** 0.5)
        params[f"w{idx + 1}"] = jax.random.uniform(
            kw, (fan_in, fan_out), jnp.float32, minval=-bound, maxval=bound
        )
        params[f"b{idx + 1}"] = jax.random.uniform(
            kb, (1, fan_out), jnp.float32, minval=-bound, maxval=bound
        )
    return params


def mlp_reference(x, params):
    h = jnp.maximum(x @ params["w1"] + params["b1"], 0.0)
    h = jnp.maximum(h @ params["w2"] + params["b2"], 0.0)
    return h @ params["w3"] + params["b3"]


if __name__ == "__main__":
    key = jax.random.PRNGKey(0)
    k_x, k_x2, k_p = jax.random.split(key, 3)

    # Small shapes consistent with the module's forward: [batch, input_dim]
    B, input_dim, output_dim = 32, 32, 16
    hidden = (128, 64)

    x = jax.random.normal(k_x, (B, input_dim), dtype=jnp.float32)
    params = init_mlp_params(k_p, input_dim, output_dim, hidden)

    # --- full-precision path: single grid step for small B, exact vs. reference ---
    prep_f32, d_out = prepare_mlp_params(params)  # weight pad/cast hoisted out of hot path
    out = jax.block_until_ready(mlp_forward(x, prep_f32, d_out=d_out))
    ref = mlp_reference(x, params)
    assert out.shape == (B, output_dim)
    assert jnp.allclose(out, ref, atol=1e-5, rtol=1e-5), "small-batch mismatch vs. reference"

    # --- larger, non-divisible batch: >=2 balanced grid steps + ragged edge block ---
    B2 = 300
    x2 = jax.random.normal(k_x2, (B2, input_dim), dtype=jnp.float32)
    out2 = jax.block_until_ready(mlp_forward(x2, prep_f32, d_out=d_out, block_batch=512))
    ref2 = mlp_reference(x2, params)
    assert out2.shape == (B2, output_dim)
    assert jnp.allclose(out2, ref2, atol=1e-4, rtol=1e-4), "large-batch mismatch vs. reference"

    # --- bf16 MXU inputs (valid on v5e/v6e/v7x): f32 accumulate, looser tolerance ---
    prep_bf16, _ = prepare_mlp_params(params, compute_dtype=jnp.bfloat16)
    out3 = jax.block_until_ready(mlp_forward(x2, prep_bf16, d_out=d_out, block_batch=512))
    assert out3.shape == (B2, output_dim)
    assert jnp.allclose(out3, ref2, atol=1e-1, rtol=1e-1), "bf16 mismatch vs. reference"

    print("KERNEL_OK")
</pallas_src>

<mosaic_0001>
module attributes {stable_mosaic.version = 11 : i64} {
  func.func @_mlp_kernel(%arg0: i32, %arg1: memref<32x32xf32, #tpu.memory_space<vmem>>, %arg2: memref<32x128xf32, #tpu.memory_space<vmem>>, %arg3: memref<1x128xf32, #tpu.memory_space<vmem>>, %arg4: memref<128x128xf32, #tpu.memory_space<vmem>>, %arg5: memref<1x128xf32, #tpu.memory_space<vmem>>, %arg6: memref<128x128xf32, #tpu.memory_space<vmem>>, %arg7: memref<1x128xf32, #tpu.memory_space<vmem>>, %arg8: memref<32x128xf32, #tpu.memory_space<vmem>>) attributes {dimension_semantics = [#tpu.dimension_semantics<parallel>], iteration_bounds = array<i64: 1>, scalar_prefetch = 0 : i64, scratch_operands = 0 : i64, tpu.core_type = #tpu.core_type<tc>, window_params = [{transform_indices = @transform_0, window_bounds = array<i64: 32, 32>}, {pipeline_mode = #tpu.pipeline_mode<synchronous>, transform_indices = @transform_1, window_bounds = array<i64: 32, 128>}, {pipeline_mode = #tpu.pipeline_mode<synchronous>, transform_indices = @transform_2, window_bounds = array<i64: 1, 128>}, {pipeline_mode = #tpu.pipeline_mode<synchronous>, transform_indices = @transform_3, window_bounds = array<i64: 128, 128>}, {pipeline_mode = #tpu.pipeline_mode<synchronous>, transform_indices = @transform_4, window_bounds = array<i64: 1, 128>}, {pipeline_mode = #tpu.pipeline_mode<synchronous>, transform_indices = @transform_5, window_bounds = array<i64: 128, 128>}, {pipeline_mode = #tpu.pipeline_mode<synchronous>, transform_indices = @transform_6, window_bounds = array<i64: 1, 128>}, {transform_indices = @transform_7, window_bounds = array<i64: 32, 128>}]} {
    %c0 = arith.constant 0 : index
    %c0_0 = arith.constant 0 : index
    %0 = vector.load %arg1[%c0, %c0_0] : memref<32x32xf32, #tpu.memory_space<vmem>>, vector<32x32xf32>
    %c0_1 = arith.constant 0 : index
    %c0_2 = arith.constant 0 : index
    %1 = vector.load %arg2[%c0_1, %c0_2] : memref<32x128xf32, #tpu.memory_space<vmem>>, vector<32x128xf32>
    %cst = arith.constant dense<0.000000e+00> : vector<32x128xf32>
    %2 = tpu.matmul %0, %1, %cst {dimension_numbers = #tpu.dot_dimension_numbers<[1], [0], [0], [1], [0, 0, 1, 1], [], []>} : vector<32x32xf32>, vector<32x128xf32>, vector<32x128xf32> -> vector<32x128xf32>
    %c0_3 = arith.constant 0 : index
    %c0_4 = arith.constant 0 : index
    %3 = vector.load %arg3[%c0_3, %c0_4] : memref<1x128xf32, #tpu.memory_space<vmem>>, vector<1x128xf32>
    %4 = vector.broadcast %3 : vector<1x128xf32> to vector<32x128xf32>
    %5 = arith.addf %2, %4 : vector<32x128xf32>
    %cst_5 = arith.constant 0.000000e+00 : f32
    %6 = vector.broadcast %cst_5 : f32 to vector<32x128xf32>
    %7 = arith.maximumf %5, %6 : vector<32x128xf32>
    %c0_6 = arith.constant 0 : index
    %c0_7 = arith.constant 0 : index
    %8 = vector.load %arg4[%c0_6, %c0_7] : memref<128x128xf32, #tpu.memory_space<vmem>>, vector<128x128xf32>
    %cst_8 = arith.constant dense<0.000000e+00> : vector<32x128xf32>
    %9 = tpu.matmul %7, %8, %cst_8 {dimension_numbers = #tpu.dot_dimension_numbers<[1], [0], [0], [1], [0, 0, 1, 1], [], []>} : vector<32x128xf32>, vector<128x128xf32>, vector<32x128xf32> -> vector<32x128xf32>
    %c0_9 = arith.constant 0 : index
    %c0_10 = arith.constant 0 : index
    %10 = vector.load %arg5[%c0_9, %c0_10] : memref<1x128xf32, #tpu.memory_space<vmem>>, vector<1x128xf32>
    %11 = vector.broadcast %10 : vector<1x128xf32> to vector<32x128xf32>
    %12 = arith.addf %9, %11 : vector<32x128xf32>
    %cst_11 = arith.constant 0.000000e+00 : f32
    %13 = vector.broadcast %cst_11 : f32 to vector<32x128xf32>
    %14 = arith.maximumf %12, %13 : vector<32x128xf32>
    %c0_12 = arith.constant 0 : index
    %c0_13 = arith.constant 0 : index
    %15 = vector.load %arg6[%c0_12, %c0_13] : memref<128x128xf32, #tpu.memory_space<vmem>>, vector<128x128xf32>
    %cst_14 = arith.constant dense<0.000000e+00> : vector<32x128xf32>
    %16 = tpu.matmul %14, %15, %cst_14 {dimension_numbers = #tpu.dot_dimension_numbers<[1], [0], [0], [1], [0, 0, 1, 1], [], []>} : vector<32x128xf32>, vector<128x128xf32>, vector<32x128xf32> -> vector<32x128xf32>
    %c0_15 = arith.constant 0 : index
    %c0_16 = arith.constant 0 : index
    %17 = vector.load %arg7[%c0_15, %c0_16] : memref<1x128xf32, #tpu.memory_space<vmem>>, vector<1x128xf32>
    %18 = vector.broadcast %17 : vector<1x128xf32> to vector<32x128xf32>
    %19 = arith.addf %16, %18 : vector<32x128xf32>
    %c0_17 = arith.constant 0 : index
    %c0_18 = arith.constant 0 : index
    %20 = vector.load %arg8[%c0_17, %c0_18] : memref<32x128xf32, #tpu.memory_space<vmem>>, vector<32x128xf32>
    tpu.vector_store %arg8[%c0_17, %c0_18], %19 {strides = array<i32>} : memref<32x128xf32, #tpu.memory_space<vmem>>, vector<32x128xf32>,
    return
  }
  func.func @transform_0(%arg0: i32) -> (i32, i32) {
    %c0_i32 = arith.constant 0 : i32
    %c0_i32_0 = arith.constant 0 : i32
    return %arg0, %c0_i32 : i32, i32
  }
  func.func @transform_1(%arg0: i32) -> (i32, i32) {
    %c0_i32 = arith.constant 0 : i32
    %c0_i32_0 = arith.constant 0 : i32
    %c0_i32_1 = arith.constant 0 : i32
    return %c0_i32, %c0_i32_0 : i32, i32
  }
  func.func @transform_2(%arg0: i32) -> (i32, i32) {
    %c0_i32 = arith.constant 0 : i32
    %c0_i32_0 = arith.constant 0 : i32
    %c0_i32_1 = arith.constant 0 : i32
    return %c0_i32, %c0_i32_0 : i32, i32
  }
  func.func @transform_3(%arg0: i32) -> (i32, i32) {
    %c0_i32 = arith.constant 0 : i32
    %c0_i32_0 = arith.constant 0 : i32
    %c0_i32_1 = arith.constant 0 : i32
    return %c0_i32, %c0_i32_0 : i32, i32
  }
  func.func @transform_4(%arg0: i32) -> (i32, i32) {
    %c0_i32 = arith.constant 0 : i32
    %c0_i32_0 = arith.constant 0 : i32
    %c0_i32_1 = arith.constant 0 : i32
    return %c0_i32, %c0_i32_0 : i32, i32
  }
  func.func @transform_5(%arg0: i32) -> (i32, i32) {
    %c0_i32 = arith.constant 0 : i32
    %c0_i32_0 = arith.constant 0 : i32
    %c0_i32_1 = arith.constant 0 : i32
    return %c0_i32, %c0_i32_0 : i32, i32
  }
  func.func @transform_6(%arg0: i32) -> (i32, i32) {
    %c0_i32 = arith.constant 0 : i32
    %c0_i32_0 = arith.constant 0 : i32
    %c0_i32_1 = arith.constant 0 : i32
    return %c0_i32, %c0_i32_0 : i32, i32
  }
  func.func @transform_7(%arg0: i32) -> (i32, i32) {
    %c0_i32 = arith.constant 0 : i32
    %c0_i32_0 = arith.constant 0 : i32
    return %arg0, %c0_i32 : i32, i32
  }
}

</mosaic_0001>

<bundles_post_ra>
// kernel: mlp_forward.1
= control target key start
LH: loop header
LB: loop body
LE: loop exit
PB: predicated region body
PF: predicated region fallthrough
CT: control target
= control target key end

     0   :  { %12 = vsyncpa [#allocation3], 0  ;;  %s761_s0 = inlined_call_operand.hbm [shape: f32[32,32], index: 0, kind: input, shape index: {}]   ;;  %s762_s1 = inlined_call_operand.hbm [shape: f32[32,128], index: 1, kind: input, shape index: {}]   ;;  %s763_s2 = inlined_call_operand.vmem [shape: f32[1,128], index: 2, kind: input, shape index: {}]   ;;  %s764_s3 = inlined_call_operand.hbm [shape: f32[128,128], index: 3, kind: input, shape index: {}]   ;;  %s765_s4 = inlined_call_operand.vmem [shape: f32[1,128], index: 4, kind: input, shape index: {}]   ;;  %s766_s5 = inlined_call_operand.hbm [shape: f32[128,128], index: 5, kind: input, shape index: {}]   ;;  %s767_s6 = inlined_call_operand.vmem [shape: f32[1,128], index: 6, kind: input, shape index: {}]   ;;  %s768_s7 = inlined_call_operand.vmem [shape: f32[32,128], index: 7, kind: output, shape index: {}]  }
   0x1   :  { %13 = vsyncpa [#allocation5], 0 }
   0x2   :  { %14 = vsyncpa [#allocation8], 0  ;;  %s666_s24 = smov [#allocation4]   ;;  %s667_s26 = smov [#allocation2]  }
   0x3   :  { %s32_s25 = sshll.u32 %s666_s24, 4  ;;  %s20_s27 = sshll.u32 %s667_s26, 4  ;;  %s33_s25 = int_to_ptr.vmem [resolvable:$true] %s32_s25  ;;  %s21_s27 = int_to_ptr.vmem [resolvable:$true] %s20_s27 }
   0x4   :  { %s588_s28 = scalar_lea.vmem %s33_s25, 512  ;;  %p593_p1 = scmp.lt.s32.totalorder %s33_s25, %s33_s25 }
   0x5   :  { %p589_p0 = scmp.ne.s32.totalorder %s33_s25, %s588_s28  ;;  %p594_p2 = scmp.lt.s32.totalorder %s588_s28, %s588_s28 }
   0x7   :  { %p595_p3 = por %p594_p2, %p593_p1 }
   0x9   :  { %p596_p4 = pnand %p595_p3, %p589_p0 }
   0xb   :  { %599 = shalt.err (!%p596_p4)
}
   0xc   :  { %s668_s29 = smov 128   ;;  %s669_s30 = smov 8  }
   0xd   :  { %38 = dma.hbm_to_vmem [thread:$0]  %s762_s1, 512, %s33_s25, [#allocation5], %s668_s29, %s668_s29, %s669_s30  }
   0xe   :  { %s608_s10 = scalar_lea.vmem %s21_s27, 512  ;;  %p613_p6 = scmp.lt.s32.totalorder %s21_s27, %s21_s27 }
   0xf   :  { %p609_p5 = scmp.ne.s32.totalorder %s21_s27, %s608_s10  ;;  %p614_p7 = scmp.lt.s32.totalorder %s608_s10, %s608_s10 }
  0x11   :  { %p615_p8 = por %p614_p7, %p613_p6 }
  0x13   :  { %p616_p9 = pnand %p615_p8, %p609_p5 }
  0x15   :  { %619 = shalt.err (!%p616_p9)
}
  0x16   :  { %26 = dma.hbm_to_vmem [thread:$0]  %s761_s0, 512, %s21_s27, [#allocation3], %s668_s29, %s668_s29, %s669_s30  }
  0x17   :  { %s670_s13 = smov [#allocation6]   ;;  %s671_s15 = smov [#allocation7]  }
  0x18   :  { %s46_s14 = sshll.u32 %s670_s13, 4  ;;  %s60_s16 = sshll.u32 %s671_s15, 4  ;;  %s47_s14 = int_to_ptr.vmem [resolvable:$true] %s46_s14  ;;  %s61_s16 = int_to_ptr.vmem [resolvable:$true] %s60_s16 }
  0x19   :  { %s628_s1 = scalar_lea.vmem %s47_s14, 2048  ;;  %p633_p11 = scmp.lt.s32.totalorder %s47_s14, %s47_s14 }
  0x1a   :  { %p629_p10 = scmp.ne.s32.totalorder %s47_s14, %s628_s1  ;;  %p634_p12 = scmp.lt.s32.totalorder %s628_s1, %s628_s1 }
  0x1c   :  { %p635_p13 = por %p634_p12, %p633_p11 }
  0x1e   :  { %p636_p0 = pnand %p635_p13, %p629_p10 }
  0x20   :  { %639 = shalt.err (!%p636_p0)
}
  0x21   :  { %52 = dma.hbm_to_vmem [thread:$0]  %s764_s3, 2048, %s47_s14, [#allocation5], %s668_s29, %s668_s29, %s669_s30  }
  0x22   :  { %s648_s0 = scalar_lea.vmem %s61_s16, 2048  ;;  %p653_p2 = scmp.lt.s32.totalorder %s61_s16, %s61_s16 }
  0x23   :  { %p649_p1 = scmp.ne.s32.totalorder %s61_s16, %s648_s0  ;;  %p654_p3 = scmp.lt.s32.totalorder %s648_s0, %s648_s0 }
  0x25   :  { %p655_p4 = por %p654_p3, %p653_p2 }
  0x27   :  { %p656_p5 = pnand %p655_p4, %p649_p1 }
  0x29   :  { %659 = shalt.err (!%p656_p5)
}
  0x2a   :  { %66 = dma.hbm_to_vmem [thread:$0]  %s766_s5, 2048, %s61_s16, [#allocation8], %s668_s29, %s668_s29, %s669_s30  }
  0x2b   :  { %660 = dma.done.wait [#allocation3], 512  }
  0x2c   :  { %661 = vsyncadd [#allocation3], 4294966784 }
  0x2d   :  { %662 = dma.done.wait [#allocation5], 2560  }
  0x2e   :  { %663 = vsyncadd [#allocation5], 4294964736 }
  0x2f   :  { %664 = dma.done.wait [#allocation8], 2048  }
  0x30   :  { %665 = vsyncadd [#allocation8], 4294965248  ;;  %vm96_vm0 = vcmask 261120   ;;  %v88_v0 = vld [vmem:[#allocation4 + $0x18] sm:$0xff]  ;;  %v87_v1 = vld [vmem:[#allocation4 + $0x10] sm:$0xff] }
  0x31   :  { %484 = vmatprep.subr.mxu0 %v88_v0  ;;  %v81_v2 = vld [vmem:[#allocation2] sm:$0xff]  ;;  %v86_v3 = vld [vmem:[#allocation4 + $0x8] sm:$0xff]  ;;  %v213_v4 = vld [vmem:[#allocation6 + $0x78] sm:$0xff] }
  0x32   :  { %485 = vmatpush3.msra.mxu0 %v88_v0  ;;  %492 = vmatprep.mubr.msk.f32.mxu0 %vm96_vm0, %v81_v2  ;;  %v212_v5 = vld [vmem:[#allocation6 + $0x70] sm:$0xff]  ;;  %v85_v6 = vld [vmem:[#allocation4] sm:$0xff]  ;;  %v211_v7 = vld [vmem:[#allocation6 + $0x68] sm:$0xff] }
  0x33   :  { %486 = vmatprep.subr.mxu0 %v87_v1  ;;  %498 = vmatprep.subr.mxu1 %v213_v4  ;;  %v82_v8 = vld [vmem:[#allocation2 + $0x8] sm:$0xff]  ;;  %v210_v9 = vld [vmem:[#allocation6 + $0x60] sm:$0xff]  ;;  %v83_v10 = vld [vmem:[#allocation2 + $0x10] sm:$0xff] }
  0x34   :  { %487 = vmatpush3.msra.mxu0 %v87_v1  ;;  %499 = vmatpush3.msra.mxu1 %v213_v4  ;;  %v209_v11 = vld [vmem:[#allocation6 + $0x58] sm:$0xff]  ;;  %v208_v13 = vld [vmem:[#allocation6 + $0x50] sm:$0xff]  ;;  %v207_v14 = vld [vmem:[#allocation6 + $0x48] sm:$0xff] }
  0x35   :  { %488 = vmatprep.subr.mxu0 %v86_v3  ;;  %500 = vmatprep.subr.mxu1 %v212_v5  ;;  %v84_v12 = vld [vmem:[#allocation2 + $0x18] sm:$0xff]  ;;  %v206_v15 = vld [vmem:[#allocation6 + $0x40] sm:$0xff]  ;;  %v204_v17 = vld [vmem:[#allocation6 + $0x30] sm:$0xff] }
  0x36   :  { %489 = vmatpush3.msra.mxu0 %v86_v3  ;;  %501 = vmatpush3.msra.mxu1 %v212_v5  ;;  %v205_v16 = vld [vmem:[#allocation6 + $0x38] sm:$0xff]  ;;  %v203_v18 = vld [vmem:[#allocation6 + $0x28] sm:$0xff]  ;;  %v202_v19 = vld [vmem:[#allocation6 + $0x20] sm:$0xff] }
  0x37   :  { %490 = vmatprep.subr.mxu0 %v85_v6  ;;  %502 = vmatprep.subr.mxu1 %v211_v7  ;;  %v201_v20 = vld [vmem:[#allocation6 + $0x18] sm:$0xff]  ;;  %v200_v21 = vld [vmem:[#allocation6 + $0x10] sm:$0xff]  ;;  %v199_v22 = vld [vmem:[#allocation6 + $0x8] sm:$0xff] }
  0x38   :  { %491 = vmatpush3.msra.mxu0 %v85_v6  ;;  %503 = vmatpush3.msra.mxu1 %v211_v7  ;;  %v198_v23 = vld [vmem:[#allocation6] sm:$0xff]  ;;  %v325_v24 = vld [vmem:[#allocation7 + $0x78] sm:$0xff]  ;;  %v324_v25 = vld [vmem:[#allocation7 + $0x70] sm:$0xff] }
  0x39   :  { %493 = vmatmul.mubr.msk.f32.vlgmr.msra.gmra.mxu0 %vm96_vm0, %v82_v8  ;;  %504 = vmatprep.subr.mxu1 %v210_v9  ;;  %v323_v26 = vld [vmem:[#allocation7 + $0x68] sm:$0xff]  ;;  %v322_v27 = vld [vmem:[#allocation7 + $0x60] sm:$0xff]  ;;  %v321_v28 = vld [vmem:[#allocation7 + $0x58] sm:$0xff] }
  0x3a   :  { %495 = vmatprep.mubr.msk.f32.mxu0 %vm96_vm0, %v83_v10  ;;  %505 = vmatpush3.msra.mxu1 %v210_v9  ;;  %v320_v29 = vld [vmem:[#allocation7 + $0x50] sm:$0xff]  ;;  %v319_v30 = vld [vmem:[#allocation7 + $0x48] sm:$0xff]  ;;  %v318_v31 = vld [vmem:[#allocation7 + $0x40] sm:$0xff] }
  0x3b   :  { %506 = vmatprep.subr.mxu1 %v209_v11  ;;  %536 = vmatprep.subr.mxu0 %v325_v24  ;;  %v317_v32 = vld [vmem:[#allocation7 + $0x38] sm:$0xff]  ;;  %v316_v33 = vld [vmem:[#allocation7 + $0x30] sm:$0xff]  ;;  %v315_v34 = vld [vmem:[#allocation7 + $0x28] sm:$0xff] }
  0x3c   :  { %507 = vmatpush3.msra.mxu1 %v209_v11  ;;  %537 = vmatpush3.msra.mxu0 %v325_v24  ;;  %v314_v35 = vld [vmem:[#allocation7 + $0x20] sm:$0xff]  ;;  %v313_v49 = vld [vmem:[#allocation7 + $0x18] sm:$0xff]  ;;  %v312_v50 = vld [vmem:[#allocation7 + $0x10] sm:$0xff] }
  0x3d   :  { %496 = vmatmul.mubr.msk.f32.gmra.mxu0 %vm96_vm0, %v84_v12  ;;  %508 = vmatprep.subr.mxu1 %v208_v13  ;;  %v429_v36 = vld [vmem:[%s763_s2] ss:$0 sm:$0xff]  ;;  %v311_v51 = vld [vmem:[#allocation7 + $0x8] sm:$0xff] }
  0x3e   :  { %509 = vmatpush3.msra.mxu1 %v208_v13  ;;  %538 = vmatprep.subr.mxu0 %v324_v25  ;;  %v310_v52 = vld [vmem:[#allocation7] sm:$0xff] }
  0x3f   :  { %510 = vmatprep.subr.mxu1 %v207_v14  ;;  %539 = vmatpush3.msra.mxu0 %v324_v25  ;;  %v434_v53 = vld [vmem:[%s765_s4] ss:$0 sm:$0xff] }
  0x40   :  { %511 = vmatpush3.msra.mxu1 %v207_v14  ;;  %540 = vmatprep.subr.mxu0 %v323_v26  ;;  %v435_v2 = vld [vmem:[%s767_s6] ss:$0 sm:$0xff] }
  0x41   :  { %512 = vmatprep.subr.mxu1 %v206_v15  ;;  %541 = vmatpush3.msra.mxu0 %v323_v26 }
  0x42   :  { %513 = vmatpush3.msra.mxu1 %v206_v15  ;;  %542 = vmatprep.subr.mxu0 %v322_v27 }
  0x43   :  { %514 = vmatprep.subr.mxu1 %v205_v16  ;;  %543 = vmatpush3.msra.mxu0 %v322_v27 }
  0x44   :  { %515 = vmatpush3.msra.mxu1 %v205_v16  ;;  %544 = vmatprep.subr.mxu0 %v321_v28 }
  0x45   :  { %516 = vmatprep.subr.mxu1 %v204_v17  ;;  %545 = vmatpush3.msra.mxu0 %v321_v28 }
  0x46   :  { %517 = vmatpush3.msra.mxu1 %v204_v17  ;;  %546 = vmatprep.subr.mxu0 %v320_v29 }
  0x47   :  { %518 = vmatprep.subr.mxu1 %v203_v18  ;;  %547 = vmatpush3.msra.mxu0 %v320_v29 }
  0x48   :  { %519 = vmatpush3.msra.mxu1 %v203_v18  ;;  %548 = vmatprep.subr.mxu0 %v319_v30 }
  0x49   :  { %520 = vmatprep.subr.mxu1 %v202_v19  ;;  %549 = vmatpush3.msra.mxu0 %v319_v30 }
  0x4a   :  { %521 = vmatpush3.msra.mxu1 %v202_v19  ;;  %550 = vmatprep.subr.mxu0 %v318_v31 }
  0x4b   :  { %522 = vmatprep.subr.mxu1 %v201_v20  ;;  %551 = vmatpush3.msra.mxu0 %v318_v31 }
  0x4c   :  { %523 = vmatpush3.msra.mxu1 %v201_v20  ;;  %552 = vmatprep.subr.mxu0 %v317_v32 }
  0x4d   :  { %524 = vmatprep.subr.mxu1 %v200_v21  ;;  %553 = vmatpush3.msra.mxu0 %v317_v32 }
  0x4e   :  { %525 = vmatpush3.msra.mxu1 %v200_v21  ;;  %554 = vmatprep.subr.mxu0 %v316_v33 }
  0x4f   :  { %526 = vmatprep.subr.mxu1 %v199_v22  ;;  %555 = vmatpush3.msra.mxu0 %v316_v33 }
  0x50   :  { %527 = vmatpush3.msra.mxu1 %v199_v22  ;;  %556 = vmatprep.subr.mxu0 %v315_v34 }
  0x51   :  { %528 = vmatprep.subr.mxu1 %v198_v23  ;;  %557 = vmatpush3.msra.mxu0 %v315_v34 }
  0x52   :  { %529 = vmatpush3.msra.mxu1 %v198_v23  ;;  %558 = vmatprep.subr.mxu0 %v314_v35 }
  0x53   :  { %559 = vmatpush3.msra.mxu0 %v314_v35 }
  0x54   :  { %560 = vmatprep.subr.mxu0 %v313_v49 }
  0x55   :  { %561 = vmatpush3.msra.mxu0 %v313_v49 }
  0x56   :  { %562 = vmatprep.subr.mxu0 %v312_v50 }
  0x57   :  { %563 = vmatpush3.msra.mxu0 %v312_v50 }
  0x58   :  { %564 = vmatprep.subr.mxu0 %v311_v51 }
  0x59   :  { %565 = vmatpush3.msra.mxu0 %v311_v51 }
  0x5a   :  { %566 = vmatprep.subr.mxu0 %v310_v52 }
  0x5b   :  { %567 = vmatpush3.msra.mxu0 %v310_v52 }
  0xf9   :  { %v494_v37 = vpop.f32.mrf.mxu0 }
  0xfa   :  { %v181_v38 = vadd.f32 %v494_v37, %v429_v36 }
  0xfb   :  { %v175_v39 = vpop.f32.mrf.mxu0 }
  0xfc   :  { %v176_v40 = vadd.f32 %v429_v36, %v175_v39  ;;  %v195_v43 = vmax.f32 %v181_v38, 0.0 }
  0xfd   :  { %v497_v41 = vpop.f32.mrf.mxu0 }
  0xfe   :  { %v194_v42 = vmax.f32 %v176_v40, 0.0  ;;  %v191_v44 = vadd.f32 %v497_v41, %v429_v36 }
  0xff   :  { %v185_v45 = vpop.f32.mrf.mxu0 }
 0x100   :  { %v186_v46 = vadd.f32 %v429_v36, %v185_v45  ;;  %530 = vmatprep.mubr.f32.mxu1 %v194_v42  ;;  %v197_v48 = vmax.f32 %v191_v44, 0.0 }
 0x101   :  { %531 = vmatmul.mubr.f32.vlgmr.msra.gmra.mxu1 %v195_v43 }
 0x102   :  { %v196_v47 = vmax.f32 %v186_v46, 0.0 }
 0x104   :  { %533 = vmatprep.mubr.f32.mxu1 %v196_v47 }
 0x105   :  { %534 = vmatmul.mubr.f32.gmra.mxu1 %v197_v48 }
 0x1c1   :  { %v532_v54 = vpop.f32.mrf.mxu1 }
 0x1c2   :  { %v293_v55 = vadd.f32 %v532_v54, %v434_v53 }
 0x1c3   :  { %v287_v56 = vpop.f32.mrf.mxu1 }
 0x1c4   :  { %v288_v57 = vadd.f32 %v434_v53, %v287_v56  ;;  %v307_v60 = vmax.f32 %v293_v55, 0.0 }
 0x1c5   :  { %v535_v58 = vpop.f32.mrf.mxu1 }
 0x1c6   :  { %v306_v59 = vmax.f32 %v288_v57, 0.0  ;;  %v303_v61 = vadd.f32 %v535_v58, %v434_v53 }
 0x1c7   :  { %v297_v62 = vpop.f32.mrf.mxu1 }
 0x1c8   :  { %v298_v63 = vadd.f32 %v434_v53, %v297_v62  ;;  %568 = vmatprep.mubr.f32.mxu0 %v306_v59  ;;  %v309_v1 = vmax.f32 %v303_v61, 0.0 }
 0x1c9   :  { %569 = vmatmul.mubr.f32.vlgmr.msra.gmra.mxu0 %v307_v60 }
 0x1ca   :  { %v308_v0 = vmax.f32 %v298_v63, 0.0 }
 0x1cc   :  { %571 = vmatprep.mubr.f32.mxu0 %v308_v0 }
 0x1cd   :  { %572 = vmatmul.mubr.f32.gmra.mxu0 %v309_v1 }
 0x289   :  { %v570_v3 = vpop.f32.mrf.mxu0 }
 0x28a   :  { %v405_v4 = vadd.f32 %v570_v3, %v435_v2 }
 0x28b   :  { %v399_v5 = vpop.f32.mrf.mxu0 }
 0x28c   :  { %419 = vst [vmem:[%s768_s7 + $0x8] sm:$0xff] %v405_v4  ;;  %v400_v6 = vadd.f32 %v435_v2, %v399_v5 }
 0x28d   :  { %v573_v7 = vpop.f32.mrf.mxu0 }
 0x28e   :  { %418 = vst [vmem:[%s768_s7] sm:$0xff] %v400_v6  ;;  %v415_v8 = vadd.f32 %v573_v7, %v435_v2 }
 0x28f   :  { %v409_v9 = vpop.f32.mrf.mxu0 }
 0x290   :  { %421 = vst [vmem:[%s768_s7 + $0x18] sm:$0xff] %v415_v8  ;;  %v410_v10 = vadd.f32 %v435_v2, %v409_v9 }
 0x292   :  { %420 = vst [vmem:[%s768_s7 + $0x10] sm:$0xff] %v410_v10 }
 0x293   :  { %426 = vsyncpa [#allocation3], 1 }
 0x294   :  { %427 = vsyncpa [#allocation5], 1 }
 0x295   :  { %428 = vsyncpa [#allocation8], 1 }

</bundles_post_ra>
